<compile_context>
chip_gen: v6e
topology: v6e:2x2x1
jax: 0.10.0
libtpu: 0.0.40
codegen_flags: <defaults>
</compile_context>

<pallas_src>
import functools

import jax
import jax.numpy as jnp
from jax.experimental import pallas as pl
from jax.experimental.pallas import tpu as pltpu


def _round_up(x, m):
    return (x + m - 1) // m * m


def _tree_lstm_kernel(hl_ref, hr_ref, cl_ref, cr_ref, wl_ref, wr_ref, b_ref,
                      h_ref, c_ref, *, u):
    """Feature-major TreeLSTM cell.

    hl/hr/cl/cr : (U, Bt) child states
    wl/wr       : (5U, U) weights (torch nn.Linear layout)
    b           : (5U, 1) fused bias (b_left + b_right)
    h/c outputs : (U, Bt)

    Gate slices are sublane-aligned; the lane axis is the batch (dense,
    unmasked vector stores, no lane padding anywhere).
    """
    mm_dtype = wl_ref.dtype
    hl = hl_ref[...].astype(mm_dtype)
    hr = hr_ref[...].astype(mm_dtype)

    # (5U, Bt) = Wl(5U,U) @ hl(U,Bt) + Wr(5U,U) @ hr(U,Bt) + b(5U,1)
    acc = jnp.dot(wl_ref[...], hl, preferred_element_type=jnp.float32)
    acc = acc + jnp.dot(wr_ref[...], hr, preferred_element_type=jnp.float32)
    acc = acc + b_ref[...]                       # lane-broadcast of (5U, 1)

    a  = acc[0 * u:1 * u, :]
    i  = acc[1 * u:2 * u, :]
    f1 = acc[2 * u:3 * u, :]
    f2 = acc[3 * u:4 * u, :]
    o  = acc[4 * u:5 * u, :]

    cl = cl_ref[...].astype(jnp.float32)
    cr = cr_ref[...].astype(jnp.float32)

    c = (jnp.tanh(a) * jax.nn.sigmoid(i)
         + jax.nn.sigmoid(f1) * cl
         + jax.nn.sigmoid(f2) * cr)
    h = jax.nn.sigmoid(o) * jnp.tanh(c)

    h_ref[...] = h.astype(h_ref.dtype)
    c_ref[...] = c.astype(c_ref.dtype)


def prepare_params(wl, bl, wr, br, *, matmul_dtype=jnp.float32):
    """One-time (offline) parameter preparation.

    wl / wr are the Linear weights stored as (U, 5U) (i.e. pre-transposed for
    `x @ w`); bl / br are (5U,) biases.  The kernel consumes them transposed
    to (5U, U) plus a fused (5U, 1) bias.  bf16 weights are valid on all of
    v5e/v6e/v7x (MXU takes bf16 natively; accumulation stays f32).
    """
    U = wl.shape[0]
    wlT = jnp.asarray(wl, jnp.float32).T.astype(matmul_dtype)   # (5U, U)
    wrT = jnp.asarray(wr, jnp.float32).T.astype(matmul_dtype)   # (5U, U)
    b = (jnp.asarray(bl, jnp.float32).reshape(-1)
         + jnp.asarray(br, jnp.float32).reshape(-1)).reshape(5 * U, 1)
    return {"wl": wlT, "wr": wrT, "b": b, "U": U}


# TODO(synk): for the real torchfold workload (many tiny per-level batches),
# fold the whole level loop into ONE pallas_call via PrefetchScalarGridSpec with
# scalar-prefetched child-index tables (gather BlockSpecs / manual DMA gathers)
# so wl/wr/b stay VMEM-resident across the entire tree traversal.
def tree_lstm_fm(left_in, right_in, params, *, block_batch=None):
    """Batched TreeLSTM cell, feature-major layout.

    left_in / right_in are (h, c) tuples with h, c of shape (U, B): units on
    sublanes, batched tree nodes on lanes.  Returns (h, c) in the same (U, B)
    layout so successive tree levels chain with zero relayout.
    """
    hl, cl = left_in
    hr, cr = right_in
    wl, wr, b = params["wl"], params["wr"], params["b"]
    U = params["U"]
    B = hl.shape[1]

    h_dtype = hl.dtype
    c_dtype = jnp.float32   # keep the recurrent cell state in f32 (tree depth)

    # Default: the whole batch in one grid step (this kernel uses <1 MiB of
    # VMEM per tile, nowhere near any generation's limit), so single-TC chips
    # (v5e/v6e) pay zero per-step overhead.
    if block_batch is None or block_batch >= B:
        bt, Bp = B, B
    else:
        bt = _round_up(max(block_batch, 128), 128)   # lane-tile-aligned batch tiles
        Bp = _round_up(B, bt)

    ins = (hl, hr, cl, cr)
    if Bp != B:
        pad = ((0, 0), (0, Bp - B))
        ins = tuple(jnp.pad(t, pad) for t in ins)
    hl_p, hr_p, cl_p, cr_p = ins

    grid = (Bp // bt,)

    nbytes = lambda t: t.size * t.dtype.itemsize
    cost = pl.CostEstimate(
        flops=2 * 2 * B * U * 5 * U,                  # two (5U,U)@(U,B) matmuls
        transcendentals=6 * B * U,                    # 4 sigmoid + 2 tanh passes
        bytes_accessed=(sum(nbytes(t) for t in (hl, hr, cl, cr, wl, wr, b))
                        + B * U * (jnp.dtype(h_dtype).itemsize
                                   + jnp.dtype(c_dtype).itemsize)),
    )

    state_spec = pl.BlockSpec((U, bt), lambda r: (0, r))
    kernel = functools.partial(_tree_lstm_kernel, u=U)

    h, c = pl.pallas_call(
        kernel,
        out_shape=(jax.ShapeDtypeStruct((U, Bp), h_dtype),
                   jax.ShapeDtypeStruct((U, Bp), c_dtype)),
        grid=grid,
        in_specs=[
            state_spec,                               # h_left  (U, B)
            state_spec,                               # h_right (U, B)
            state_spec,                               # c_left  (U, B)
            state_spec,                               # c_right (U, B)
            pl.BlockSpec(wl.shape, lambda r: (0, 0)),  # weights VMEM-resident
            pl.BlockSpec(wr.shape, lambda r: (0, 0)),
            pl.BlockSpec(b.shape, lambda r: (0, 0)),
        ],
        out_specs=(state_spec, state_spec),
        compiler_params=pltpu.CompilerParams(
            # grid=(1,) by default -> single step, no per-step overhead.
            # TODO(synk): for very large B on v7x, use pltpu.CORE_PARALLEL on
            # this axis (plain "parallel" does not shard across the two TCs).
            dimension_semantics=("arbitrary",) if grid[0] == 1 else ("parallel",),
        ),
        cost_estimate=cost,
    )(hl_p, hr_p, cl_p, cr_p, wl, wr, b)

    if Bp != B:
        h = h[:, :B]
        c = c[:, :B]
    return h, c


def tree_lstm(left_in, right_in, params, **kwargs):
    """Torch-layout convenience wrapper: (B, U) in, (B, U) out.

    The transposes here are XLA-level layout ops for interface compatibility at
    the tree boundary (leaves / root) only; the recursion over tree levels
    should stay in feature-major form via tree_lstm_fm (zero relayout).
    """
    hl, cl = left_in
    hr, cr = right_in
    h, c = tree_lstm_fm((hl.T, cl.T), (hr.T, cr.T), params, **kwargs)
    return h.T, c.T


def tree_lstm_ref(left_in, right_in, raw_params):
    hl, cl = left_in
    hr, cr = right_in
    wl, bl, wr, br = raw_params
    U = hl.shape[1]
    lstm_in = hl @ wl + bl + hr @ wr + br
    a, i, f1, f2, o = [lstm_in[:, k * U:(k + 1) * U] for k in range(5)]
    c = jnp.tanh(a) * jax.nn.sigmoid(i) + jax.nn.sigmoid(f1) * cl + jax.nn.sigmoid(f2) * cr
    h = jax.nn.sigmoid(o) * jnp.tanh(c)
    return h, c


if __name__ == "__main__":
    B, U = 256, 32        # 256 batched tree nodes (torchfold use case), num_units=32
    key = jax.random.PRNGKey(0)
    ks = jax.random.split(key, 8)

    # Linear(num_units, 5*num_units) x2; weights stored as (U, 5U) for `x @ w`.
    bound = 1.0 / (U ** 0.5)
    wl = jax.random.uniform(ks[0], (U, 5 * U), jnp.float32, -bound, bound)
    bl = jax.random.uniform(ks[1], (5 * U,), jnp.float32, -bound, bound)
    wr = jax.random.uniform(ks[2], (U, 5 * U), jnp.float32, -bound, bound)
    br = jax.random.uniform(ks[3], (5 * U,), jnp.float32, -bound, bound)

    # Child states in torch layout (B, U).
    hl = jax.random.normal(ks[4], (B, U), jnp.float32)
    cl = jax.random.normal(ks[5], (B, U), jnp.float32)
    hr = jax.random.normal(ks[6], (B, U), jnp.float32)
    cr = jax.random.normal(ks[7], (B, U), jnp.float32)

    h1_ref, c1_ref = tree_lstm_ref((hl, cl), (hr, cr), (wl, bl, wr, br))

    # ---- f32 weights, feature-major fast path -------------------------------
    p32 = prepare_params(wl, bl, wr, br, matmul_dtype=jnp.float32)
    left_fm = (hl.T, cl.T)       # one-time layout at the tree leaves
    right_fm = (hr.T, cr.T)
    h1_fm, c1_fm = tree_lstm_fm(left_fm, right_fm, p32)
    jax.block_until_ready((h1_fm, c1_fm))
    assert jnp.allclose(h1_fm.T, h1_ref, atol=1e-5, rtol=1e-5)
    assert jnp.allclose(c1_fm.T, c1_ref, atol=1e-5, rtol=1e-5)

    # ---- chain a second tree level feature-major (no relayout between levels)
    h2_ref, c2_ref = tree_lstm_ref((h1_ref, c1_ref), (h1_ref, c1_ref),
                                   (wl, bl, wr, br))
    h2_fm, c2_fm = tree_lstm_fm((h1_fm, c1_fm), (h1_fm, c1_fm), p32)
    jax.block_until_ready((h2_fm, c2_fm))
    assert jnp.allclose(h2_fm.T, h2_ref, atol=1e-4, rtol=1e-4)
    assert jnp.allclose(c2_fm.T, c2_ref, atol=1e-4, rtol=1e-4)

    # ---- torch-layout compatibility wrapper ----------------------------------
    h1_bm, c1_bm = tree_lstm((hl, cl), (hr, cr), p32)
    jax.block_until_ready((h1_bm, c1_bm))
    assert jnp.allclose(h1_bm, h1_ref, atol=1e-5, rtol=1e-5)
    assert jnp.allclose(c1_bm, c1_ref, atol=1e-5, rtol=1e-5)

    # ---- bf16 weight path (halves weight DMA on v5e/v6e/v7x alike) ----------
    pbf = prepare_params(wl, bl, wr, br, matmul_dtype=jnp.bfloat16)
    hbf, cbf = tree_lstm_fm(left_fm, right_fm, pbf)
    jax.block_until_ready((hbf, cbf))
    assert jnp.allclose(hbf.T, h1_ref, atol=5e-2, rtol=5e-2)
    assert jnp.allclose(cbf.T, c1_ref, atol=5e-2, rtol=5e-2)

    print("KERNEL_OK")
</pallas_src>

<mosaic_0001>
module attributes {stable_mosaic.version = 11 : i64} {
  func.func @_tree_lstm_kernel(%arg0: i32, %arg1: memref<32x256xf32, #tpu.memory_space<vmem>>, %arg2: memref<32x256xf32, #tpu.memory_space<vmem>>, %arg3: memref<32x256xf32, #tpu.memory_space<vmem>>, %arg4: memref<32x256xf32, #tpu.memory_space<vmem>>, %arg5: memref<160x32xf32, #tpu.memory_space<vmem>>, %arg6: memref<160x32xf32, #tpu.memory_space<vmem>>, %arg7: memref<160x1xf32, #tpu.memory_space<vmem>>, %arg8: memref<32x256xf32, #tpu.memory_space<vmem>>, %arg9: memref<32x256xf32, #tpu.memory_space<vmem>>) attributes {dimension_semantics = [#tpu.dimension_semantics<arbitrary>], iteration_bounds = array<i64: 1>, scalar_prefetch = 0 : i64, scratch_operands = 0 : i64, tpu.core_type = #tpu.core_type<tc>, window_params = [{transform_indices = @transform_0, window_bounds = array<i64: 32, 256>}, {transform_indices = @transform_1, window_bounds = array<i64: 32, 256>}, {transform_indices = @transform_2, window_bounds = array<i64: 32, 256>}, {transform_indices = @transform_3, window_bounds = array<i64: 32, 256>}, {pipeline_mode = #tpu.pipeline_mode<synchronous>, transform_indices = @transform_4, window_bounds = array<i64: 160, 32>}, {pipeline_mode = #tpu.pipeline_mode<synchronous>, transform_indices = @transform_5, window_bounds = array<i64: 160, 32>}, {pipeline_mode = #tpu.pipeline_mode<synchronous>, transform_indices = @transform_6, window_bounds = array<i64: 160, 1>}, {transform_indices = @transform_7, window_bounds = array<i64: 32, 256>}, {transform_indices = @transform_8, window_bounds = array<i64: 32, 256>}]} {
    %c0 = arith.constant 0 : index
    %c0_0 = arith.constant 0 : index
    %0 = vector.load %arg1[%c0, %c0_0] : memref<32x256xf32, #tpu.memory_space<vmem>>, vector<32x256xf32>
    %c0_1 = arith.constant 0 : index
    %c0_2 = arith.constant 0 : index
    %1 = vector.load %arg2[%c0_1, %c0_2] : memref<32x256xf32, #tpu.memory_space<vmem>>, vector<32x256xf32>
    %c0_3 = arith.constant 0 : index
    %c0_4 = arith.constant 0 : index
    %2 = vector.load %arg5[%c0_3, %c0_4] : memref<160x32xf32, #tpu.memory_space<vmem>>, vector<160x32xf32>
    %cst = arith.constant dense<0.000000e+00> : vector<160x256xf32>
    %3 = tpu.matmul %2, %0, %cst {dimension_numbers = #tpu.dot_dimension_numbers<[1], [0], [0], [1], [0, 0, 1, 1], [], []>} : vector<160x32xf32>, vector<32x256xf32>, vector<160x256xf32> -> vector<160x256xf32>
    %c0_5 = arith.constant 0 : index
    %c0_6 = arith.constant 0 : index
    %4 = vector.load %arg6[%c0_5, %c0_6] : memref<160x32xf32, #tpu.memory_space<vmem>>, vector<160x32xf32>
    %cst_7 = arith.constant dense<0.000000e+00> : vector<160x256xf32>
    %5 = tpu.matmul %4, %1, %cst_7 {dimension_numbers = #tpu.dot_dimension_numbers<[1], [0], [0], [1], [0, 0, 1, 1], [], []>} : vector<160x32xf32>, vector<32x256xf32>, vector<160x256xf32> -> vector<160x256xf32>
    %6 = arith.addf %3, %5 : vector<160x256xf32>
    %c0_8 = arith.constant 0 : index
    %c0_9 = arith.constant 0 : index
    %7 = vector.load %arg7[%c0_8, %c0_9] : memref<160x1xf32, #tpu.memory_space<vmem>>, vector<160x1xf32>
    %8 = vector.broadcast %7 : vector<160x1xf32> to vector<160x256xf32>
    %9 = arith.addf %6, %8 : vector<160x256xf32>
    %10 = vector.extract_strided_slice %9 {offsets = [0, 0], sizes = [32, 256], strides = [1, 1]} : vector<160x256xf32> to vector<32x256xf32>
    %11 = vector.extract_strided_slice %9 {offsets = [32, 0], sizes = [32, 256], strides = [1, 1]} : vector<160x256xf32> to vector<32x256xf32>
    %12 = vector.extract_strided_slice %9 {offsets = [64, 0], sizes = [32, 256], strides = [1, 1]} : vector<160x256xf32> to vector<32x256xf32>
    %13 = vector.extract_strided_slice %9 {offsets = [96, 0], sizes = [32, 256], strides = [1, 1]} : vector<160x256xf32> to vector<32x256xf32>
    %14 = vector.extract_strided_slice %9 {offsets = [128, 0], sizes = [32, 256], strides = [1, 1]} : vector<160x256xf32> to vector<32x256xf32>
    %c0_10 = arith.constant 0 : index
    %c0_11 = arith.constant 0 : index
    %15 = vector.load %arg3[%c0_10, %c0_11] : memref<32x256xf32, #tpu.memory_space<vmem>>, vector<32x256xf32>
    %c0_12 = arith.constant 0 : index
    %c0_13 = arith.constant 0 : index
    %16 = vector.load %arg4[%c0_12, %c0_13] : memref<32x256xf32, #tpu.memory_space<vmem>>, vector<32x256xf32>
    %17 = math.tanh %10 : vector<32x256xf32>
    %18 = arith.negf %11 : vector<32x256xf32>
    %19 = math.exp %18 : vector<32x256xf32>
    %cst_14 = arith.constant 1.000000e+00 : f32
    %20 = vector.broadcast %cst_14 : f32 to vector<32x256xf32>
    %21 = arith.addf %20, %19 : vector<32x256xf32>
    %22 = arith.divf %20, %21 : vector<32x256xf32>
    %23 = arith.mulf %17, %22 : vector<32x256xf32>
    %24 = arith.negf %12 : vector<32x256xf32>
    %25 = math.exp %24 : vector<32x256xf32>
    %cst_15 = arith.constant 1.000000e+00 : f32
    %26 = vector.broadcast %cst_15 : f32 to vector<32x256xf32>
    %27 = arith.addf %26, %25 : vector<32x256xf32>
    %28 = arith.divf %26, %27 : vector<32x256xf32>
    %29 = arith.mulf %28, %15 : vector<32x256xf32>
    %30 = arith.addf %23, %29 : vector<32x256xf32>
    %31 = arith.negf %13 : vector<32x256xf32>
    %32 = math.exp %31 : vector<32x256xf32>
    %cst_16 = arith.constant 1.000000e+00 : f32
    %33 = vector.broadcast %cst_16 : f32 to vector<32x256xf32>
    %34 = arith.addf %33, %32 : vector<32x256xf32>
    %35 = arith.divf %33, %34 : vector<32x256xf32>
    %36 = arith.mulf %35, %16 : vector<32x256xf32>
    %37 = arith.addf %30, %36 : vector<32x256xf32>
    %38 = arith.negf %14 : vector<32x256xf32>
    %39 = math.exp %38 : vector<32x256xf32>
    %cst_17 = arith.constant 1.000000e+00 : f32
    %40 = vector.broadcast %cst_17 : f32 to vector<32x256xf32>
    %41 = arith.addf %40, %39 : vector<32x256xf32>
    %42 = arith.divf %40, %41 : vector<32x256xf32>
    %43 = math.tanh %37 : vector<32x256xf32>
    %44 = arith.mulf %42, %43 : vector<32x256xf32>
    %c0_18 = arith.constant 0 : index
    %c0_19 = arith.constant 0 : index
    %45 = vector.load %arg8[%c0_18, %c0_19] : memref<32x256xf32, #tpu.memory_space<vmem>>, vector<32x256xf32>
    tpu.vector_store %arg8[%c0_18, %c0_19], %44 {strides = array<i32>} : memref<32x256xf32, #tpu.memory_space<vmem>>, vector<32x256xf32>,
    %c0_20 = arith.constant 0 : index
    %c0_21 = arith.constant 0 : index
    %46 = vector.load %arg9[%c0_20, %c0_21] : memref<32x256xf32, #tpu.memory_space<vmem>>, vector<32x256xf32>
    tpu.vector_store %arg9[%c0_20, %c0_21], %37 {strides = array<i32>} : memref<32x256xf32, #tpu.memory_space<vmem>>, vector<32x256xf32>,
    return
  }
  func.func @transform_0(%arg0: i32) -> (i32, i32) {
    %c0_i32 = arith.constant 0 : i32
    %c0_i32_0 = arith.constant 0 : i32
    return %c0_i32, %arg0 : i32, i32
  }
  func.func @transform_1(%arg0: i32) -> (i32, i32) {
    %c0_i32 = arith.constant 0 : i32
    %c0_i32_0 = arith.constant 0 : i32
    return %c0_i32, %arg0 : i32, i32
  }
  func.func @transform_2(%arg0: i32) -> (i32, i32) {
    %c0_i32 = arith.constant 0 : i32
    %c0_i32_0 = arith.constant 0 : i32
    return %c0_i32, %arg0 : i32, i32
  }
  func.func @transform_3(%arg0: i32) -> (i32, i32) {
    %c0_i32 = arith.constant 0 : i32
    %c0_i32_0 = arith.constant 0 : i32
    return %c0_i32, %arg0 : i32, i32
  }
  func.func @transform_4(%arg0: i32) -> (i32, i32) {
    %c0_i32 = arith.constant 0 : i32
    %c0_i32_0 = arith.constant 0 : i32
    %c0_i32_1 = arith.constant 0 : i32
    return %c0_i32, %c0_i32_0 : i32, i32
  }
  func.func @transform_5(%arg0: i32) -> (i32, i32) {
    %c0_i32 = arith.constant 0 : i32
    %c0_i32_0 = arith.constant 0 : i32
    %c0_i32_1 = arith.constant 0 : i32
    return %c0_i32, %c0_i32_0 : i32, i32
  }
  func.func @transform_6(%arg0: i32) -> (i32, i32) {
    %c0_i32 = arith.constant 0 : i32
    %c0_i32_0 = arith.constant 0 : i32
    %c0_i32_1 = arith.constant 0 : i32
    return %c0_i32, %c0_i32_0 : i32, i32
  }
  func.func @transform_7(%arg0: i32) -> (i32, i32) {
    %c0_i32 = arith.constant 0 : i32
    %c0_i32_0 = arith.constant 0 : i32
    return %c0_i32, %arg0 : i32, i32
  }
  func.func @transform_8(%arg0: i32) -> (i32, i32) {
    %c0_i32 = arith.constant 0 : i32
    %c0_i32_0 = arith.constant 0 : i32
    return %c0_i32, %arg0 : i32, i32
  }
}

</mosaic_0001>

<bundles_post_ra>
// kernel: tpu_custom_call.1
= control target key start
LH: loop header
LB: loop body
LE: loop exit
PB: predicated region body
PF: predicated region fallthrough
CT: control target
= control target key end

     0   :  { %14 = vsyncpa [#allocation3], 0  ;;  %vm86_vm0 = vcmask 261120   ;;  %v1341_v18 = vmov 0.0   ;;  %v1342_v21 = vmov 0   ;;  %s1881_s0 = inlined_call_operand.vmem [shape: f32[32,256], index: 0, kind: input, shape index: {}]   ;;  %s1882_s1 = inlined_call_operand.vmem [shape: f32[32,256], index: 1, kind: input, shape index: {}]   ;;  %s1883_s2 = inlined_call_operand.vmem [shape: f32[32,256], index: 2, kind: input, shape index: {}]   ;;  %s1884_s3 = inlined_call_operand.vmem [shape: f32[32,256], index: 3, kind: input, shape index: {}]   ;;  %s1885_s4 = inlined_call_operand.vmem [shape: f32[160,32], index: 4, kind: input, shape index: {}]   ;;  %s1886_s5 = inlined_call_operand.vmem [shape: f32[160,32], index: 5, kind: input, shape index: {}]   ;;  %s1887_s6 = inlined_call_operand.vmem [shape: f32[160,1], index: 6, kind: input, shape index: {}]   ;;  %s1888_s7 = inlined_call_operand.hbm [shape: f32[32,256], index: 7, kind: output, shape index: {0}]   ;;  %s1889_s8 = inlined_call_operand.hbm [shape: f32[32,256], index: 8, kind: output, shape index: {1}]  }
   0x1   :  { %v45_v0 = vld [vmem:[%s1882_s1 + $0x38] sm:$0xff]  ;;  %v44_v2 = vld [vmem:[%s1882_s1 + $0x30] sm:$0xff]  ;;  %v43_v4 = vld [vmem:[%s1882_s1 + $0x28] sm:$0xff]  ;;  %211 = vmatprep.mubr.f32.mxu0 %v1341_v18  ;;  %456 = vmatprep.mubr.f32.mxu1 %v1341_v18 }
   0x2   :  { %v37_v1 = vld [vmem:[%s1881_s0 + $0x38] sm:$0xff]  ;;  %171 = vmatprep.subr.mxu0 %v45_v0  ;;  %v36_v3 = vld [vmem:[%s1881_s0 + $0x30] sm:$0xff]  ;;  %v35_v5 = vld [vmem:[%s1881_s0 + $0x28] sm:$0xff]  ;;  %1135 = vset.pattern.permute.xlu0 %v1342_v21 }
   0x3   :  { %416 = vmatprep.subr.mxu1 %v37_v1  ;;  %172 = vmatpush1.msra.mxu0 %v44_v2  ;;  %v42_v6 = vld [vmem:[%s1882_s1 + $0x20] sm:$0xff]  ;;  %v41_v8 = vld [vmem:[%s1882_s1 + $0x18] sm:$0xff]  ;;  %v40_v10 = vld [vmem:[%s1882_s1 + $0x10] sm:$0xff] }
   0x4   :  { %417 = vmatpush1.msra.mxu1 %v36_v3  ;;  %v34_v7 = vld [vmem:[%s1881_s0 + $0x20] sm:$0xff]  ;;  %173 = vmatprep.subr.mxu0 %v43_v4  ;;  %v33_v9 = vld [vmem:[%s1881_s0 + $0x18] sm:$0xff]  ;;  %v32_v11 = vld [vmem:[%s1881_s0 + $0x10] sm:$0xff] }
   0x5   :  { %418 = vmatprep.subr.mxu1 %v35_v5  ;;  %174 = vmatpush1.msra.mxu0 %v42_v6  ;;  %v39_v12 = vld [vmem:[%s1882_s1 + $0x8] sm:$0xff]  ;;  %v38_v14 = vld [vmem:[%s1882_s1] sm:$0xff]  ;;  %v583_v23 = vld [vmem:[%s1887_s6 + $0x30] sm:$0xff] }
   0x6   :  { %419 = vmatpush1.msra.mxu1 %v34_v7  ;;  %v31_v13 = vld [vmem:[%s1881_s0 + $0x8] sm:$0xff]  ;;  %175 = vmatprep.subr.mxu0 %v41_v8  ;;  %v30_v15 = vld [vmem:[%s1881_s0] sm:$0xff]  ;;  %v68_v24 = vld [vmem:[%s1886_s5 + $0x10] sm:$0xff] }
   0x7   :  { %420 = vmatprep.subr.mxu1 %v33_v9  ;;  %176 = vmatpush1.msra.mxu0 %v40_v10  ;;  %v66_v16 = vld [vmem:[%s1886_s5] sm:$0xff]  ;;  %v67_v19 = vld [vmem:[%s1886_s5 + $0x8] sm:$0xff]  ;;  %v48_v25 = vld [vmem:[%s1885_s4 + $0x10] sm:$0xff] }
   0x8   :  { %421 = vmatpush1.msra.mxu1 %v32_v11  ;;  %177 = vmatprep.subr.mxu0 %v39_v12  ;;  %v46_v17 = vld [vmem:[%s1885_s4] sm:$0xff]  ;;  %v47_v20 = vld [vmem:[%s1885_s4 + $0x8] sm:$0xff]  ;;  %v584_v27 = vld [vmem:[%s1887_s6 + $0x38] sm:$0xff] }
   0x9   :  { %422 = vmatprep.subr.mxu1 %v31_v13  ;;  %178 = vmatpush1.msra.mxu0 %v38_v14  ;;  %v581_v22 = vld [vmem:[%s1887_s6 + $0x20] sm:$0xff]  ;;  %v582_v26 = vld [vmem:[%s1887_s6 + $0x28] sm:$0xff]  ;;  %v69_v28 = vld [vmem:[%s1886_s5 + $0x18] sm:$0xff] }
   0xa   :  { %423 = vmatpush1.msra.mxu1 %v30_v15  ;;  %1057 = vmatmul.mubr.msk.f32.vlgmr.msra.gmra.mxu0 %vm86_vm0, %v66_v16  ;;  %v49_v29 = vld [vmem:[%s1885_s4 + $0x18] sm:$0xff]  ;;  %v585_v30 = vld [vmem:[%s1887_s6 + $0x40] sm:$0xff]  ;;  %v586_v31 = vld [vmem:[%s1887_s6 + $0x48] sm:$0xff] }
   0xb   :  { %1077 = vmatmul.mubr.msk.f32.vlgmr.msra.gmra.mxu1 %vm86_vm0, %v46_v17  ;;  %217 = vmatprep.mubr.f32.mxu0 %v1341_v18  ;;  %v70_v32 = vld [vmem:[%s1886_s5 + $0x20] sm:$0xff]  ;;  %v587_v34 = vld [vmem:[%s1887_s6 + $0x50] sm:$0xff]  ;;  %v588_v35 = vld [vmem:[%s1887_s6 + $0x58] sm:$0xff] }
   0xc   :  { %462 = vmatprep.mubr.f32.mxu1 %v1341_v18  ;;  %1136 = vset.pattern.permute.xlu1 %v1342_v21  ;;  %v50_v33 = vld [vmem:[%s1885_s4 + $0x20] sm:$0xff] }
   0xd   :  { %619 = vperm.xlu0 %1135, %v581_v22   ;;  %629 = vperm.xlu1 %1136, %v583_v23  }
   0xe   :  { %1058 = vmatmul.mubr.msk.f32.gmra.mxu0 %vm86_vm0, %v67_v19 }
   0xf   :  { %1078 = vmatmul.mubr.msk.f32.gmra.mxu1 %vm86_vm0, %v47_v20  ;;  %223 = vmatprep.mubr.f32.mxu0 %v1341_v18 }
  0x10   :  { %468 = vmatprep.mubr.f32.mxu1 %v1341_v18 }
  0x11   :  { %624 = vperm.xlu0 %1135, %v582_v26   ;;  %634 = vperm.xlu1 %1136, %v584_v27  }
  0x12   :  { %1059 = vmatmul.mubr.msk.f32.gmra.mxu0 %vm86_vm0, %v68_v24 }
  0x13   :  { %1079 = vmatmul.mubr.msk.f32.gmra.mxu1 %vm86_vm0, %v48_v25  ;;  %229 = vmatprep.mubr.f32.mxu0 %v1341_v18 }
  0x14   :  { %474 = vmatprep.mubr.f32.mxu1 %v1341_v18 }
  0x15   :  { %639 = vperm.xlu0 %1135, %v585_v30   ;;  %644 = vperm.xlu1 %1136, %v586_v31  }
  0x16   :  { %1060 = vmatmul.mubr.msk.f32.gmra.mxu0 %vm86_vm0, %v69_v28 }
  0x17   :  { %1080 = vmatmul.mubr.msk.f32.gmra.mxu1 %vm86_vm0, %v49_v29  ;;  %235 = vmatprep.mubr.f32.mxu0 %v1341_v18 }
  0x18   :  { %480 = vmatprep.mubr.f32.mxu1 %v1341_v18 }
  0x19   :  { %15 = vsyncpa [#allocation5], 0  ;;  %v71_v36 = vld [vmem:[%s1886_s5 + $0x28] sm:$0xff]  ;;  %649 = vperm.xlu0 %1135, %v587_v34   ;;  %654 = vperm.xlu1 %1136, %v588_v35   ;;  %v589_v38 = vld [vmem:[%s1887_s6 + $0x60] sm:$0xff]  ;;  %s1343_s15 = smov [#allocation4]  }
  0x1a   :  { %1061 = vmatmul.mubr.msk.f32.gmra.mxu0 %vm86_vm0, %v70_v32  ;;  %v51_v37 = vld [vmem:[%s1885_s4 + $0x28] sm:$0xff]  ;;  %v72_v40 = vld [vmem:[%s1886_s5 + $0x30] sm:$0xff]  ;;  %v592_v43 = vld [vmem:[%s1887_s6 + $0x78] sm:$0xff]  ;;  %s1042_s16 = sshll.u32 %s1343_s15, 4  ;;  %s1043_s16 = int_to_ptr.vmem [resolvable:$true] %s1042_s16 }
  0x1b   :  { %1081 = vmatmul.mubr.msk.f32.gmra.mxu1 %vm86_vm0, %v50_v33  ;;  %241 = vmatprep.mubr.f32.mxu0 %v1341_v18  ;;  %v590_v39 = vld [vmem:[%s1887_s6 + $0x68] sm:$0xff]  ;;  %v52_v41 = vld [vmem:[%s1885_s4 + $0x30] sm:$0xff]  ;;  %v73_v44 = vld [vmem:[%s1886_s5 + $0x38] sm:$0xff]  ;;  %p1302_p1 = scmp.lt.s32.totalorder %s1043_s16, %s1043_s16 }
  0x1c   :  { %486 = vmatprep.mubr.f32.mxu1 %v1341_v18  ;;  %v591_v42 = vld [vmem:[%s1887_s6 + $0x70] sm:$0xff]  ;;  %v53_v45 = vld [vmem:[%s1885_s4 + $0x38] sm:$0xff]  ;;  %v577_v46 = vld [vmem:[%s1887_s6] sm:$0xff] }
  0x1d   :  { %659 = vperm.xlu0 %1135, %v589_v38   ;;  %664 = vperm.xlu1 %1136, %v590_v39   ;;  %v578_v47 = vld [vmem:[%s1887_s6 + $0x8] sm:$0xff]  ;;  %v74_v48 = vld [vmem:[%s1886_s5 + $0x40] sm:$0xff]  ;;  %v579_v50 = vld [vmem:[%s1887_s6 + $0x10] sm:$0xff] }
  0x1e   :  { %1062 = vmatmul.mubr.msk.f32.gmra.mxu0 %vm86_vm0, %v71_v36  ;;  %v54_v49 = vld [vmem:[%s1885_s4 + $0x40] sm:$0xff]  ;;  %v580_v51 = vld [vmem:[%s1887_s6 + $0x18] sm:$0xff]  ;;  %v75_v52 = vld [vmem:[%s1886_s5 + $0x48] sm:$0xff] }
  0x1f   :  { %1082 = vmatmul.mubr.msk.f32.gmra.mxu1 %vm86_vm0, %v51_v37  ;;  %247 = vmatprep.mubr.f32.mxu0 %v1341_v18  ;;  %v55_v53 = vld [vmem:[%s1885_s4 + $0x48] sm:$0xff]  ;;  %v593_v55 = vld [vmem:[%s1887_s6 + $0x80] sm:$0xff]  ;;  %v76_v56 = vld [vmem:[%s1886_s5 + $0x50] sm:$0xff] }
  0x20   :  { %492 = vmatprep.mubr.f32.mxu1 %v1341_v18  ;;  %v594_v54 = vld [vmem:[%s1887_s6 + $0x88] sm:$0xff]  ;;  %v56_v57 = vld [vmem:[%s1885_s4 + $0x50] sm:$0xff]  ;;  %v596_v58 = vld [vmem:[%s1887_s6 + $0x98] sm:$0xff] }
  0x21   :  { %669 = vperm.xlu0 %1135, %v591_v42   ;;  %674 = vperm.xlu1 %1136, %v592_v43   ;;  %v595_v59 = vld [vmem:[%s1887_s6 + $0x90] sm:$0xff]  ;;  %v77_v60 = vld [vmem:[%s1886_s5 + $0x58] sm:$0xff]  ;;  %v78_v62 = vld [vmem:[%s1886_s5 + $0x60] sm:$0xff] }
  0x22   :  { %1063 = vmatmul.mubr.msk.f32.gmra.mxu0 %vm86_vm0, %v72_v40  ;;  %v57_v61 = vld [vmem:[%s1885_s4 + $0x58] sm:$0xff]  ;;  %v58_v63 = vld [vmem:[%s1885_s4 + $0x60] sm:$0xff]  ;;  %v79_v0 = vld [vmem:[%s1886_s5 + $0x68] sm:$0xff] }
  0x23   :  { %1083 = vmatmul.mubr.msk.f32.gmra.mxu1 %vm86_vm0, %v52_v41  ;;  %253 = vmatprep.mubr.f32.mxu0 %v1341_v18  ;;  %v59_v1 = vld [vmem:[%s1885_s4 + $0x68] sm:$0xff]  ;;  %v80_v2 = vld [vmem:[%s1886_s5 + $0x70] sm:$0xff]  ;;  %v81_v4 = vld [vmem:[%s1886_s5 + $0x78] sm:$0xff] }
  0x24   :  { %498 = vmatprep.mubr.f32.mxu1 %v1341_v18  ;;  %v60_v3 = vld [vmem:[%s1885_s4 + $0x70] sm:$0xff]  ;;  %v61_v5 = vld [vmem:[%s1885_s4 + $0x78] sm:$0xff]  ;;  %v82_v6 = vld [vmem:[%s1886_s5 + $0x80] sm:$0xff] }
  0x25   :  { %599 = vperm.xlu0 %1135, %v577_v46   ;;  %604 = vperm.xlu1 %1136, %v578_v47   ;;  %v62_v7 = vld [vmem:[%s1885_s4 + $0x80] sm:$0xff]  ;;  %v83_v8 = vld [vmem:[%s1886_s5 + $0x88] sm:$0xff]  ;;  %v84_v10 = vld [vmem:[%s1886_s5 + $0x90] sm:$0xff] }
  0x26   :  { %1064 = vmatmul.mubr.msk.f32.gmra.mxu0 %vm86_vm0, %v73_v44  ;;  %v63_v9 = vld [vmem:[%s1885_s4 + $0x88] sm:$0xff]  ;;  %v64_v11 = vld [vmem:[%s1885_s4 + $0x90] sm:$0xff]  ;;  %v85_v12 = vld [vmem:[%s1886_s5 + $0x98] sm:$0xff] }
  0x27   :  { %1084 = vmatmul.mubr.msk.f32.gmra.mxu1 %vm86_vm0, %v53_v45  ;;  %259 = vmatprep.mubr.f32.mxu0 %v1341_v18  ;;  %v65_v13 = vld [vmem:[%s1885_s4 + $0x98] sm:$0xff] }
  0x28   :  { %504 = vmatprep.mubr.f32.mxu1 %v1341_v18 }
  0x29   :  { %609 = vperm.xlu0 %1135, %v579_v50   ;;  %614 = vperm.xlu1 %1136, %v580_v51  }
  0x2a   :  { %1065 = vmatmul.mubr.msk.f32.gmra.mxu0 %vm86_vm0, %v74_v48 }
  0x2b   :  { %1085 = vmatmul.mubr.msk.f32.gmra.mxu1 %vm86_vm0, %v54_v49  ;;  %265 = vmatprep.mubr.f32.mxu0 %v1341_v18 }
  0x2c   :  { %510 = vmatprep.mubr.f32.mxu1 %v1341_v18 }
  0x2d   :  { %684 = vperm.xlu1 %1136, %v594_v54   ;;  %679 = vperm.xlu0 %1135, %v593_v55  }
  0x2e   :  { %1066 = vmatmul.mubr.msk.f32.gmra.mxu0 %vm86_vm0, %v75_v52 }
  0x2f   :  { %1086 = vmatmul.mubr.msk.f32.gmra.mxu1 %vm86_vm0, %v55_v53  ;;  %271 = vmatprep.mubr.f32.mxu0 %v1341_v18 }
  0x30   :  { %516 = vmatprep.mubr.f32.mxu1 %v1341_v18 }
  0x31   :  { %694 = vperm.xlu1 %1136, %v596_v58   ;;  %689 = vperm.xlu0 %1135, %v595_v59  }
  0x32   :  { %1067 = vmatmul.mubr.msk.f32.gmra.mxu0 %vm86_vm0, %v76_v56 }
  0x33   :  { %1087 = vmatmul.mubr.msk.f32.gmra.mxu1 %vm86_vm0, %v56_v57  ;;  %277 = vmatprep.mubr.f32.mxu0 %v1341_v18 }
  0x34   :  { %522 = vmatprep.mubr.f32.mxu1 %v1341_v18 }
  0x36   :  { %1068 = vmatmul.mubr.msk.f32.gmra.mxu0 %vm86_vm0, %v77_v60 }
  0x37   :  { %1088 = vmatmul.mubr.msk.f32.gmra.mxu1 %vm86_vm0, %v57_v61  ;;  %283 = vmatprep.mubr.f32.mxu0 %v1341_v18 }
  0x38   :  { %528 = vmatprep.mubr.f32.mxu1 %v1341_v18 }
  0x3a   :  { %1069 = vmatmul.mubr.msk.f32.gmra.mxu0 %vm86_vm0, %v78_v62 }
  0x3b   :  { %1089 = vmatmul.mubr.msk.f32.gmra.mxu1 %vm86_vm0, %v58_v63  ;;  %289 = vmatprep.mubr.f32.mxu0 %v1341_v18 }
  0x3c   :  { %534 = vmatprep.mubr.f32.mxu1 %v1341_v18 }
  0x3e   :  { %1070 = vmatmul.mubr.msk.f32.gmra.mxu0 %vm86_vm0, %v79_v0 }
  0x3f   :  { %1090 = vmatmul.mubr.msk.f32.gmra.mxu1 %vm86_vm0, %v59_v1  ;;  %295 = vmatprep.mubr.f32.mxu0 %v1341_v18 }
  0x40   :  { %540 = vmatprep.mubr.f32.mxu1 %v1341_v18 }
  0x42   :  { %1071 = vmatmul.mubr.msk.f32.gmra.mxu0 %vm86_vm0, %v80_v2 }
  0x43   :  { %1091 = vmatmul.mubr.msk.f32.gmra.mxu1 %vm86_vm0, %v60_v3  ;;  %301 = vmatprep.mubr.f32.mxu0 %v1341_v18 }
  0x44   :  { %546 = vmatprep.mubr.f32.mxu1 %v1341_v18 }
  0x46   :  { %1072 = vmatmul.mubr.msk.f32.gmra.mxu0 %vm86_vm0, %v81_v4 }
  0x47   :  { %1092 = vmatmul.mubr.msk.f32.gmra.mxu1 %vm86_vm0, %v61_v5  ;;  %307 = vmatprep.mubr.f32.mxu0 %v1341_v18 }
  0x48   :  { %552 = vmatprep.mubr.f32.mxu1 %v1341_v18 }
  0x4a   :  { %1073 = vmatmul.mubr.msk.f32.gmra.mxu0 %vm86_vm0, %v82_v6 }
  0x4b   :  { %1093 = vmatmul.mubr.msk.f32.gmra.mxu1 %vm86_vm0, %v62_v7  ;;  %313 = vmatprep.mubr.f32.mxu0 %v1341_v18 }
  0x4c   :  { %558 = vmatprep.mubr.f32.mxu1 %v1341_v18 }
  0x4e   :  { %1074 = vmatmul.mubr.msk.f32.gmra.mxu0 %vm86_vm0, %v83_v8 }
  0x4f   :  { %1094 = vmatmul.mubr.msk.f32.gmra.mxu1 %vm86_vm0, %v63_v9  ;;  %319 = vmatprep.mubr.f32.mxu0 %v1341_v18 }
  0x50   :  { %564 = vmatprep.mubr.f32.mxu1 %v1341_v18 }
  0x52   :  { %1075 = vmatmul.mubr.msk.f32.gmra.mxu0 %vm86_vm0, %v84_v10 }
  0x53   :  { %1095 = vmatmul.mubr.msk.f32.gmra.mxu1 %vm86_vm0, %v64_v11  ;;  %325 = vmatprep.mubr.f32.mxu0 %v1341_v18 }
  0x54   :  { %570 = vmatprep.mubr.f32.mxu1 %v1341_v18 }
  0x56   :  { %1076 = vmatmul.mubr.msk.f32.gmra.mxu0 %vm86_vm0, %v85_v12 }
  0x57   :  { %1096 = vmatmul.mubr.msk.f32.gmra.mxu1 %vm86_vm0, %v65_v13 }
  0x88   :  { %v620_v14 = vpop.permute.xlu0 %619  ;;  %v1700_v15 = vpop.permute.xlu1 %629 }
  0x8c   :  { %v625_v16 = vpop.permute.xlu0 %624  ;;  %v1702_v17 = vpop.permute.xlu1 %634 }
  0x90   :  { %v1704_v19 = vpop.permute.xlu0 %639  ;;  %v1706_v18 = vpop.permute.xlu1 %644 }
  0x94   :  { %v1708_v22 = vpop.permute.xlu0 %649  ;;  %v1710_v29 = vpop.permute.xlu1 %654 }
  0x98   :  { %v1712_v33 = vpop.permute.xlu0 %659  ;;  %v1714_v40 = vpop.permute.xlu1 %664 }
  0x9c   :  { %v1718_v44 = vpop.permute.xlu0 %669  ;;  %v1724_v51 = vpop.permute.xlu1 %674 }
  0xa0   :  { %v600_v55 = vpop.permute.xlu0 %599  ;;  %v605_v2 = vpop.permute.xlu1 %604 }
  0xca   :  { %v213_v20 = vpop.f32.mrf.mxu0 }
  0xcb   :  { %v458_v21 = vpop.f32.mrf.mxu1 }
  0xcc   :  { %v459_v23 = vadd.f32 %v458_v21, %v213_v20  ;;  %v215_v24 = vpop.f32.mrf.mxu0  ;;  %v610_v20 = vpop.permute.xlu0 %609 }
  0xcd   :  { %v460_v25 = vpop.f32.mrf.mxu1 }
  0xce   :  { %v461_v26 = vadd.f32 %v460_v25, %v215_v24  ;;  %v219_v27 = vpop.f32.mrf.mxu0  ;;  %v697_v63 = vadd.f32 %v600_v55, %v459_v23 }
  0xcf   :  { %v464_v28 = vpop.f32.mrf.mxu1 }
  0xd0   :  { %v465_v30 = vadd.f32 %v464_v28, %v219_v27  ;;  %v221_v31 = vpop.f32.mrf.mxu0  ;;  %v698_v6 = vadd.f32 %v600_v55, %v461_v26 }
  0xd1   :  { %v466_v32 = vpop.f32.mrf.mxu1 }
  0xd2   :  { %v467_v34 = vadd.f32 %v466_v32, %v221_v31  ;;  %v225_v35 = vpop.f32.mrf.mxu0  ;;  %v699_v12 = vadd.f32 %v605_v2, %v465_v30 }
  0xd3   :  { %v470_v36 = vpop.f32.mrf.mxu1 }
  0xd4   :  { %v471_v37 = vadd.f32 %v470_v36, %v225_v35  ;;  %v227_v38 = vpop.f32.mrf.mxu0  ;;  %v700_v25 = vadd.f32 %v605_v2, %v467_v34  ;;  %v615_v36 = vpop.permute.xlu1 %614 }
  0xd5   :  { %v472_v39 = vpop.f32.mrf.mxu1 }
  0xd6   :  { %v1716_v41 = vadd.f32 %v472_v39, %v227_v38  ;;  %v231_v42 = vpop.f32.mrf.mxu0  ;;  %v701_v32 = vadd.f32 %v610_v20, %v471_v37 }
  0xd7   :  { %v476_v43 = vpop.f32.mrf.mxu1 }
  0xd8   :  { %v1720_v45 = vadd.f32 %v476_v43, %v231_v42  ;;  %v233_v46 = vpop.f32.mrf.mxu0  ;;  %v702_v34 = vadd.f32 %v610_v20, %v1716_v41 }
  0xd9   :  { %v478_v47 = vpop.f32.mrf.mxu1 }
  0xda   :  { %v1722_v48 = vadd.f32 %v478_v47, %v233_v46  ;;  %v237_v49 = vpop.f32.mrf.mxu0  ;;  %v703_v37 = vadd.f32 %v615_v36, %v1720_v45 }
  0xdb   :  { %v482_v50 = vpop.f32.mrf.mxu1 }
  0xdc   :  { %v483_v52 = vadd.f32 %v482_v50, %v237_v49  ;;  %v239_v53 = vpop.f32.mrf.mxu0  ;;  %v704_v50 = vadd.f32 %v615_v36, %v1722_v48 }
  0xdd   :  { %v484_v54 = vpop.f32.mrf.mxu1 }
  0xde   :  { %v705_v56 = vadd.f32 %v620_v14, %v483_v52  ;;  %v485_v57 = vadd.f32 %v484_v54, %v239_v53  ;;  %v243_v58 = vpop.f32.mrf.mxu0 }
  0xdf   :  { %v488_v59 = vpop.f32.mrf.mxu1 }
  0xe0   :  { %v1097_v60 = vmul.f32 -1.442695, %v705_v56  ;;  %v706_v61 = vadd.f32 %v620_v14, %v485_v57  ;;  %v489_v62 = vadd.f32 %v488_v59, %v243_v58  ;;  %v245_v0 = vpop.f32.mrf.mxu0 }
  0xe1   :  { %v490_v1 = vpop.f32.mrf.mxu1 }
  0xe2   :  { %1137 = vpow2.f32 %v1097_v60  ;;  %v1098_v3 = vmul.f32 -1.442695, %v706_v61  ;;  %v707_v4 = vadd.f32 %v625_v16, %v489_v62  ;;  %v491_v5 = vadd.f32 %v490_v1, %v245_v0  ;;  %v249_v7 = vpop.f32.mrf.mxu0 }
  0xe3   :  { %v494_v8 = vpop.f32.mrf.mxu1 }
  0xe4   :  { %1139 = vpow2.f32 %v1098_v3  ;;  %v1099_v9 = vmul.f32 -1.442695, %v707_v4  ;;  %v708_v10 = vadd.f32 %v625_v16, %v491_v5  ;;  %v495_v11 = vadd.f32 %v494_v8, %v249_v7  ;;  %v251_v13 = vpop.f32.mrf.mxu0 }
  0xe5   :  { %1141 = vtanh.f32 %v697_v63  ;;  %v496_v14 = vpop.f32.mrf.mxu1 }
  0xe6   :  { %1143 = vpow2.f32 %v1099_v9  ;;  %v1100_v21 = vmul.f32 -1.442695, %v708_v10  ;;  %v709_v23 = vadd.f32 %v1700_v15, %v495_v11  ;;  %v497_v24 = vadd.f32 %v496_v14, %v251_v13  ;;  %v255_v27 = vpop.f32.mrf.mxu0 }
  0xe7   :  { %1145 = vtanh.f32 %v698_v6  ;;  %v500_v26 = vpop.f32.mrf.mxu1 }
  0xe8   :  { %1147 = vpow2.f32 %v1100_v21  ;;  %v1101_v28 = vmul.f32 -1.442695, %v709_v23  ;;  %v710_v31 = vadd.f32 %v1700_v15, %v497_v24  ;;  %v501_v16 = vadd.f32 %v500_v26, %v255_v27  ;;  %v257_v30 = vpop.f32.mrf.mxu0 }
  0xe9   :  { %1149 = vtanh.f32 %v699_v12  ;;  %v502_v35 = vpop.f32.mrf.mxu1 }
  0xea   :  { %1151 = vpow2.f32 %v1101_v28  ;;  %v1102_v38 = vmul.f32 -1.442695, %v710_v31  ;;  %v711_v39 = vadd.f32 %v1702_v17, %v501_v16  ;;  %v503_v42 = vadd.f32 %v502_v35, %v257_v30  ;;  %v261_v43 = vpop.f32.mrf.mxu0 }
  0xeb   :  { %1153 = vtanh.f32 %v700_v25  ;;  %v506_v46 = vpop.f32.mrf.mxu1 }
  0xec   :  { %1155 = vpow2.f32 %v1102_v38  ;;  %v1103_v47 = vmul.f32 -1.442695, %v711_v39  ;;  %v712_v15 = vadd.f32 %v1702_v17, %v503_v42  ;;  %v507_v49 = vadd.f32 %v506_v46, %v261_v43  ;;  %v263_v52 = vpop.f32.mrf.mxu0 }
  0xed   :  { %1157 = vtanh.f32 %v701_v32  ;;  %v508_v53 = vpop.f32.mrf.mxu1 }
  0xee   :  { %1159 = vpow2.f32 %v1103_v47  ;;  %v1104_v54 = vmul.f32 -1.442695, %v712_v15  ;;  %v713_v55 = vadd.f32 %v1704_v19, %v507_v49  ;;  %v509_v56 = vadd.f32 %v508_v53, %v263_v52  ;;  %v267_v57 = vpop.f32.mrf.mxu0 }
  0xef   :  { %v1138_v41 = vpop.eup %1137  ;;  %1161 = vtanh.f32 %v702_v34  ;;  %v512_v58 = vpop.f32.mrf.mxu1 }
  0xf0   :  { %v785_v59 = vadd.f32 1.0, %v1138_v41  ;;  %1163 = vpow2.f32 %v1104_v54  ;;  %v1105_v17 = vmul.f32 -1.442695, %v713_v55  ;;  %v714_v60 = vadd.f32 %v1704_v19, %v509_v56  ;;  %v269_v48 = vpop.f32.mrf.mxu0 }
  0xf1   :  { %v1140_v61 = vpop.eup %1139  ;;  %1165 = vtanh.f32 %v703_v37  ;;  %v513_v45 = vadd.f32 %v512_v58, %v267_v57  ;;  %v514_v62 = vpop.f32.mrf.mxu1 }
  0xf2   :  { %v1735_v63 = vpop.eup %1141  ;;  %1167 = vtanh.f32 %v704_v50  ;;  %v786_v0 = vadd.f32 1.0, %v1140_v61  ;;  %v1106_v1 = vmul.f32 -1.442695, %v714_v60  ;;  %v515_v2 = vadd.f32 %v514_v62, %v269_v48  ;;  %v273_v5 = vpop.f32.mrf.mxu0 }
  0xf3   :  { %v1144_v3 = vpop.eup %1143  ;;  %1169 = vpow2.f32 %v1105_v17  ;;  %v715_v4 = vadd.f32 %v1706_v18, %v513_v45  ;;  %v518_v6 = vpop.f32.mrf.mxu1 }
  0xf4   :  { %v1738_v7 = vpop.eup %1145  ;;  %1171 = vrcp.f32 %v785_v59  ;;  %v787_v19 = vadd.f32 1.0, %v1144_v3  ;;  %v716_v8 = vadd.f32 %v1706_v18, %v515_v2  ;;  %v519_v9 = vadd.f32 %v518_v6, %v273_v5  ;;  %v275_v12 = vpop.f32.mrf.mxu0 }
  0xf5   :  { %v1148_v10 = vpop.eup %1147  ;;  %1173 = vpow2.f32 %v1106_v1  ;;  %v1107_v11 = vmul.f32 -1.442695, %v715_v4  ;;  %v520_v13 = vpop.f32.mrf.mxu1 }
  0xf6   :  { %v1741_v14 = vpop.eup %1149  ;;  %1175 = vrcp.f32 %v786_v0  ;;  %v788_v20 = vadd.f32 1.0, %v1148_v10  ;;  %v1108_v21 = vmul.f32 -1.442695, %v716_v8  ;;  %v717_v23 = vadd.f32 %v1708_v22, %v519_v9  ;;  %v279_v27 = vpop.f32.mrf.mxu0 }
  0xf7   :  { %v1152_v24 = vpop.eup %1151  ;;  %1177 = vpow2.f32 %v1107_v11  ;;  %v521_v25 = vadd.f32 %v520_v13, %v275_v12  ;;  %v524_v26 = vpop.f32.mrf.mxu1 }
  0xf8   :  { %v1744_v28 = vpop.eup %1153  ;;  %1179 = vrcp.f32 %v787_v19  ;;  %v789_v18 = vadd.f32 1.0, %v1152_v24  ;;  %v1109_v31 = vmul.f32 -1.442695, %v717_v23  ;;  %v525_v16 = vadd.f32 %v524_v26, %v279_v27  ;;  %v281_v35 = vpop.f32.mrf.mxu0 }
  0xf9   :  { %v1156_v32 = vpop.eup %1155  ;;  %1181 = vpow2.f32 %v1108_v21  ;;  %v718_v30 = vadd.f32 %v1708_v22, %v521_v25  ;;  %v526_v36 = vpop.f32.mrf.mxu1 }
  0xfa   :  { %v1747_v38 = vpop.eup %1157  ;;  %1183 = vrcp.f32 %v788_v20  ;;  %v790_v39 = vadd.f32 1.0, %v1156_v32  ;;  %v719_v42 = vadd.f32 %v1710_v29, %v525_v16  ;;  %v527_v34 = vadd.f32 %v526_v36, %v281_v35  ;;  %v285_v47 = vpop.f32.mrf.mxu0 }
  0xfb   :  { %v1160_v43 = vpop.eup %1159  ;;  %1185 = vpow2.f32 %v1109_v31  ;;  %v1110_v46 = vmul.f32 -1.442695, %v718_v30  ;;  %v530_v15 = vpop.f32.mrf.mxu1 }
  0xfc   :  { %v1750_v49 = vpop.eup %1161  ;;  %1187 = vrcp.f32 %v789_v18  ;;  %v791_v37 = vadd.f32 1.0, %v1160_v43  ;;  %v1111_v50 = vmul.f32 -1.442695, %v719_v42  ;;  %v720_v22 = vadd.f32 %v1710_v29, %v527_v34  ;;  %v287_v54 = vpop.f32.mrf.mxu0 }
  0xfd   :  { %v1164_v52 = vpop.eup %1163  ;;  %1189 = vpow2.f32 %v1110_v46  ;;  %v531_v53 = vadd.f32 %v530_v15, %v285_v47  ;;  %v532_v55 = vpop.f32.mrf.mxu1 }
  0xfe   :  { %v1753_v56 = vpop.eup %1165  ;;  %1191 = vrcp.f32 %v790_v39  ;;  %v792_v41 = vadd.f32 1.0, %v1164_v52  ;;  %v1112_v57 = vmul.f32 -1.442695, %v720_v22  ;;  %v533_v58 = vadd.f32 %v532_v55, %v287_v54  ;;  %v291_v60 = vpop.f32.mrf.mxu0 }
  0xff   :  { %v1755_v59 = vpop.eup %1167  ;;  %1193 = vpow2.f32 %v1111_v50  ;;  %v721_v17 = vadd.f32 %v1712_v33, %v531_v53  ;;  %v536_v61 = vpop.f32.mrf.mxu1 }
 0x100   :  { %v1170_v45 = vpop.eup %1169  ;;  %1195 = vrcp.f32 %v791_v37  ;;  %v722_v29 = vadd.f32 %v1712_v33, %v533_v58  ;;  %v537_v48 = vadd.f32 %v536_v61, %v291_v60  ;;  %v293_v2 = vpop.f32.mrf.mxu0 }
 0x101   :  { %v1759_v62 = vpop.eup %1171  ;;  %v841_v0 = vadd.f32 1.0, %v1170_v45  ;;  %1197 = vpow2.f32 %v1112_v57  ;;  %v1113_v1 = vmul.f32 -1.442695, %v721_v17  ;;  %v538_v3 = vpop.f32.mrf.mxu1 }
 0x102   :  { %v1174_v4 = vpop.eup %1173  ;;  %1199 = vrcp.f32 %v792_v41  ;;  %v1114_v5 = vmul.f32 -1.442695, %v722_v29  ;;  %v723_v6 = vadd.f32 %v1714_v40, %v537_v48  ;;  %v539_v19 = vadd.f32 %v538_v3, %v293_v2  ;;  %v297_v10 = vpop.f32.mrf.mxu0 }
 0x103   :  { %v1762_v8 = vpop.eup %1175  ;;  %1201 = vrcp.f32 %v841_v0  ;;  %v842_v9 = vadd.f32 1.0, %v1174_v4  ;;  %v542_v33 = vpop.f32.mrf.mxu1 }
 0x104   :  { %v1178_v11 = vpop.eup %1177  ;;  %1203 = vpow2.f32 %v1113_v1  ;;  %v1115_v12 = vmul.f32 -1.442695, %v723_v6  ;;  %v724_v13 = vadd.f32 %v1714_v40, %v539_v19  ;;  %v543_v23 = vadd.f32 %v542_v33, %v297_v10  ;;  %v299_v24 = vpop.f32.mrf.mxu0 }
 0x105   :  { %v1765_v20 = vpop.eup %1179  ;;  %1205 = vrcp.f32 %v842_v9  ;;  %v843_v21 = vadd.f32 1.0, %v1178_v11  ;;  %v544_v25 = vpop.f32.mrf.mxu1 }
 0x106   :  { %v1182_v27 = vpop.eup %1181  ;;  %1207 = vpow2.f32 %v1114_v5  ;;  %v1116_v26 = vmul.f32 -1.442695, %v724_v13  ;;  %v545_v18 = vadd.f32 %v544_v25, %v299_v24  ;;  %v725_v32 = vadd.f32 %v1718_v44, %v543_v23  ;;  %v303_v30 = vpop.f32.mrf.mxu0 }
 0x107   :  { %v1767_v31 = vpop.eup %1183  ;;  %1209 = vrcp.f32 %v843_v21  ;;  %v844_v16 = vadd.f32 1.0, %v1182_v27  ;;  %v548_v35 = vpop.f32.mrf.mxu1 }
 0x108   :  { %v1186_v40 = vpop.eup %1185  ;;  %1211 = vpow2.f32 %v1115_v12  ;;  %v726_v36 = vadd.f32 %v1718_v44, %v545_v18  ;;  %v549_v39 = vadd.f32 %v548_v35, %v303_v30  ;;  %v1117_v43 = vmul.f32 -1.442695, %v725_v32  ;;  %v305_v46 = vpop.f32.mrf.mxu0 }
 0x109   :  { %v1771_v42 = vpop.eup %1187  ;;  %1213 = vrcp.f32 %v844_v16  ;;  %v845_v34 = vadd.f32 1.0, %v1186_v40  ;;  %v550_v47 = vpop.f32.mrf.mxu1 }
 0x10a   :  { %v1190_v15 = vpop.eup %1189  ;;  %1215 = vpow2.f32 %v1116_v26  ;;  %v1118_v37 = vmul.f32 -1.442695, %v726_v36  ;;  %v727_v50 = vadd.f32 %v1724_v51, %v549_v39  ;;  %v551_v53 = vadd.f32 %v550_v47, %v305_v46  ;;  %v309_v54 = vpop.f32.mrf.mxu0 }
 0x10b   :  { %v1774_v22 = vpop.eup %1191  ;;  %1217 = vrcp.f32 %v845_v34  ;;  %v846_v52 = vadd.f32 1.0, %v1190_v15  ;;  %v554_v44 = vpop.f32.mrf.mxu1 }
 0x10c   :  { %v1194_v55 = vpop.eup %1193  ;;  %v680_v41 = vpop.permute.xlu0 %679  ;;  %1219 = vpow2.f32 %v1117_v43  ;;  %v1119_v57 = vmul.f32 -1.442695, %v727_v50  ;;  %v555_v58 = vadd.f32 %v554_v44, %v309_v54  ;;  %v728_v61 = vadd.f32 %v1724_v51, %v551_v53 }
 0x10d   :  { %v1776_v17 = vpop.eup %1195  ;;  %1221 = vrcp.f32 %v846_v52  ;;  %v847_v60 = vadd.f32 1.0, %v1194_v55  ;;  %v311_v45 = vpop.f32.mrf.mxu0 }
 0x10e   :  { %v556_v29 = vpop.f32.mrf.mxu1  ;;  %v1198_v48 = vpop.eup %1197  ;;  %1223 = vpow2.f32 %v1118_v37  ;;  %v729_v0 = vadd.f32 %v680_v41, %v555_v58  ;;  %v1120_v4 = vmul.f32 -1.442695, %v728_v61 }
 0x10f   :  { %v557_v1 = vadd.f32 %v556_v29, %v311_v45  ;;  %v1779_v2 = vpop.eup %1199  ;;  %1225 = vrcp.f32 %v847_v60  ;;  %v848_v3 = vadd.f32 1.0, %v1198_v48  ;;  %v315_v5 = vpop.f32.mrf.mxu0 }
 0x110   :  { %v560_v6 = vpop.f32.mrf.mxu1  ;;  %v1781_v19 = vpop.eup %1201  ;;  %1227 = vpow2.f32 %v1119_v57  ;;  %v1121_v10 = vmul.f32 -1.442695, %v729_v0 }
 0x111   :  { %v685_v9 = vpop.permute.xlu1 %684  ;;  %v730_v33 = vadd.f32 %v680_v41, %v557_v1  ;;  %v561_v51 = vadd.f32 %v560_v6, %v315_v5  ;;  %v1204_v11 = vpop.eup %1203  ;;  %1229 = vrcp.f32 %v848_v3  ;;  %v737_v6 = vld [vmem:[%s1883_s2] sm:$0xff] }
 0x112   :  { %v317_v12 = vpop.f32.mrf.mxu0  ;;  %v562_v13 = vpop.f32.mrf.mxu1  ;;  %v905_v23 = vadd.f32 1.0, %v1204_v11  ;;  %1231 = vpow2.f32 %v1120_v4 }
 0x113   :  { %v1783_v21 = vpop.eup %1205  ;;  %v1122_v24 = vmul.f32 -1.442695, %v730_v33  ;;  %v731_v25 = vadd.f32 %v685_v9, %v561_v51  ;;  %1233 = vpow2.f32 %v1121_v10  ;;  %v563_v26 = vadd.f32 %v562_v13, %v317_v12  ;;  %v690_v30 = vpop.permute.xlu0 %689  ;;  %v738_v12 = vld [vmem:[%s1883_s2 + $0x8] sm:$0xff] }
 0x114   :  { %v1208_v27 = vpop.eup %1207  ;;  %v321_v18 = vpop.f32.mrf.mxu0  ;;  %1235 = vrcp.f32 %v905_v23 }
 0x115   :  { %v566_v16 = vpop.f32.mrf.mxu1  ;;  %v1785_v32 = vpop.eup %1209  ;;  %v906_v35 = vadd.f32 1.0, %v1208_v27  ;;  %v1123_v40 = vmul.f32 -1.442695, %v731_v25  ;;  %1237 = vpow2.f32 %v1122_v24  ;;  %v732_v34 = vadd.f32 %v685_v9, %v563_v26 }
 0x116   :  { %v567_v36 = vadd.f32 %v566_v16, %v321_v18  ;;  %v1212_v39 = vpop.eup %1211  ;;  %v323_v43 = vpop.f32.mrf.mxu0  ;;  %v865_v24 = vmul.f32 %v1781_v19, %v737_v6  ;;  %v739_v18 = vld [vmem:[%s1883_s2 + $0x10] sm:$0xff]  ;;  %v745_v16 = vld [vmem:[%s1884_s3] sm:$0xff] }
 0x117   :  { %v568_v46 = vpop.f32.mrf.mxu1  ;;  %v1787_v47 = vpop.eup %1213  ;;  %1239 = vrcp.f32 %v906_v35  ;;  %v907_v15 = vadd.f32 1.0, %v1212_v39  ;;  %v1124_v53 = vmul.f32 -1.442695, %v732_v34  ;;  %v809_v35 = vmul.f32 %v1759_v62, %v1735_v63  ;;  %v740_v34 = vld [vmem:[%s1883_s2 + $0x18] sm:$0xff] }
 0x118   :  { %v733_v37 = vadd.f32 %v690_v30, %v567_v36  ;;  %v569_v50 = vadd.f32 %v568_v46, %v323_v43  ;;  %v1216_v52 = vpop.eup %1215  ;;  %1241 = vpow2.f32 %v1123_v40  ;;  %v327_v54 = vpop.f32.mrf.mxu0  ;;  %v866_v40 = vmul.f32 %v1783_v21, %v738_v12  ;;  %v746_v43 = vld [vmem:[%s1884_s3 + $0x8] sm:$0xff]  ;;  %v741_v21 = vld [vmem:[%s1883_s2 + $0x20] sm:$0xff] }
 0x119   :  { %v572_v44 = vpop.f32.mrf.mxu1  ;;  %v1789_v55 = vpop.eup %1217  ;;  %1243 = vrcp.f32 %v907_v15  ;;  %v908_v41 = vadd.f32 1.0, %v1216_v52  ;;  %v810_v39 = vmul.f32 %v1762_v8, %v1738_v7  ;;  %v873_v63 = vadd.f32 %v865_v24, %v809_v35 }
 0x11a   :  { %v1125_v57 = vmul.f32 -1.442695, %v733_v37  ;;  %v734_v58 = vadd.f32 %v690_v30, %v569_v50  ;;  %v1220_v60 = vpop.eup %1219  ;;  %1245 = vpow2.f32 %v1124_v53  ;;  %v573_v61 = vadd.f32 %v572_v44, %v327_v54  ;;  %v329_v45 = vpop.f32.mrf.mxu0  ;;  %v747_v50 = vld [vmem:[%s1884_s3 + $0x10] sm:$0xff] }
 0x11b   :  { %v574_v29 = vpop.f32.mrf.mxu1  ;;  %v1791_v48 = vpop.eup %1221  ;;  %1247 = vrcp.f32 %v908_v41  ;;  %v909_v1 = vadd.f32 1.0, %v1220_v60  ;;  %v867_v62 = vmul.f32 %v1785_v32, %v739_v18  ;;  %v811_v8 = vmul.f32 %v1765_v20, %v1741_v14  ;;  %v742_v32 = vld [vmem:[%s1883_s2 + $0x28] sm:$0xff]  ;;  %v748_v20 = vld [vmem:[%s1884_s3 + $0x18] sm:$0xff]  ;;  %v751_v18 = vld [vmem:[%s1884_s3 + $0x30] sm:$0xff] }
 0x11c   :  { %v695_v0 = vpop.permute.xlu1 %694  ;;  %v1126_v3 = vmul.f32 -1.442695, %v734_v58  ;;  %v575_v4 = vadd.f32 %v574_v29, %v329_v45  ;;  %v1224_v5 = vpop.eup %1223  ;;  %1249 = vpow2.f32 %v1125_v57  ;;  %v874_v54 = vadd.f32 %v866_v40, %v810_v39 }
 0x11d   :  { %v735_v9 = vadd.f32 %v695_v0, %v573_v61  ;;  %v1796_v10 = vpop.eup %1225  ;;  %1251 = vrcp.f32 %v909_v1  ;;  %v910_v33 = vadd.f32 1.0, %v1224_v5  ;;  %v868_v44 = vmul.f32 %v1787_v47, %v740_v34 }
 0x11e   :  { %v736_v51 = vadd.f32 %v695_v0, %v575_v4  ;;  %v1228_v11 = vpop.eup %1227  ;;  %1253 = vpow2.f32 %v1126_v3  ;;  %v812_v60 = vmul.f32 %v1767_v31, %v1744_v28  ;;  %v869_v14 = vmul.f32 %v1789_v55, %v741_v21  ;;  %v743_v31 = vld [vmem:[%s1883_s2 + $0x30] sm:$0xff]  ;;  %v749_v55 = vld [vmem:[%s1884_s3 + $0x20] sm:$0xff] }
 0x11f   :  { %v1127_v13 = vmul.f32 -1.442695, %v735_v9  ;;  %v1801_v23 = vpop.eup %1229  ;;  %1255 = vrcp.f32 %v910_v33  ;;  %v911_v25 = vadd.f32 1.0, %v1228_v11  ;;  %v875_v47 = vadd.f32 %v867_v62, %v811_v8  ;;  %v750_v11 = vld [vmem:[%s1884_s3 + $0x28] sm:$0xff] }
 0x120   :  { %v1128_v27 = vmul.f32 -1.442695, %v736_v51  ;;  %v1232_v26 = vpop.eup %1231  ;;  %v813_v3 = vmul.f32 %v1771_v42, %v1747_v38  ;;  %v870_v28 = vmul.f32 %v1791_v48, %v742_v32  ;;  %v876_v6 = vadd.f32 %v868_v44, %v812_v60  ;;  %v744_v48 = vld [vmem:[%s1883_s2 + $0x38] sm:$0xff] }
 0x121   :  { %1257 = vpow2.f32 %v1127_v13  ;;  %v1234_v30 = vpop.eup %1233  ;;  %v912_v19 = vadd.f32 1.0, %v1232_v26  ;;  %v814_v38 = vmul.f32 %v1774_v22, %v1750_v49  ;;  %v871_v24 = vmul.f32 %v1796_v10, %v743_v31 }
 0x122   :  { %1259 = vrcp.f32 %v911_v25  ;;  %v1236_v36 = vpop.eup %1235  ;;  %v969_v46 = vadd.f32 1.0, %v1234_v30  ;;  %v877_v42 = vadd.f32 %v869_v14, %v813_v3  ;;  %v815_v49 = vmul.f32 %v1776_v17, %v1753_v56  ;;  %v752_v56 = vld [vmem:[%s1884_s3 + $0x38] sm:$0xff]  ;;  %s1297_s3 = scalar_lea.vmem %s1043_s16, 1024 }
 0x123   :  { %1261 = vpow2.f32 %v1128_v27  ;;  %v1238_v15 = vpop.eup %1237  ;;  %v929_v37 = vmul.f32 %v1236_v36, %v745_v16  ;;  %v878_v22 = vadd.f32 %v870_v28, %v814_v38  ;;  %v872_v35 = vmul.f32 %v1801_v23, %v744_v48  ;;  %p1298_p0 = scmp.ne.s32.totalorder %s1043_s16, %s1297_s3  ;;  %p1303_p2 = scmp.lt.s32.totalorder %s1297_s3, %s1297_s3 }
 0x124   :  { %1263 = vrcp.f32 %v912_v19  ;;  %v1240_v7 = vpop.eup %1239  ;;  %v970_v52 = vadd.f32 1.0, %v1238_v15  ;;  %v816_v36 = vmul.f32 %v1779_v2, %v1755_v59  ;;  %v879_v34 = vadd.f32 %v871_v24, %v815_v49 }
 0x125   :  { %v1242_v53 = vpop.eup %1241  ;;  %v937_v41 = vadd.f32 %v929_v37, %v873_v63  ;;  %v930_v57 = vmul.f32 %v1240_v7, %v746_v43  ;;  %1265 = vrcp.f32 %v969_v46  ;;  %p1304_p3 = por %p1303_p2, %p1302_p1 }
 0x126   :  { %v1244_v58 = vpop.eup %1243  ;;  %v971_v61 = vadd.f32 1.0, %v1242_v53  ;;  %v880_v63 = vadd.f32 %v872_v35, %v816_v36 }
 0x127   :  { %v1246_v45 = vpop.eup %1245  ;;  %1267 = vtanh.f32 %v937_v41  ;;  %1017 = vst [vmem:[#allocation4] sm:$0xff] %v937_v41  ;;  %v938_v29 = vadd.f32 %v930_v57, %v874_v54  ;;  %v931_v0 = vmul.f32 %v1244_v58, %v747_v50  ;;  %p1305_p4 = pnand %p1304_p3, %p1298_p0 }
 0x128   :  { %v1248_v1 = vpop.eup %1247  ;;  %1269 = vrcp.f32 %v970_v52  ;;  %v972_v4 = vadd.f32 1.0, %v1246_v45 }
 0x129   :  { %v1250_v5 = vpop.eup %1249  ;;  %1271 = vtanh.f32 %v938_v29  ;;  %1018 = vst [vmem:[#allocation4 + $0x8] sm:$0xff] %v938_v29  ;;  %v939_v9 = vadd.f32 %v931_v0, %v875_v47  ;;  %v932_v33 = vmul.f32 %v1248_v1, %v748_v20 }
 0x12a   :  { %v1252_v51 = vpop.eup %1251  ;;  %1273 = vrcp.f32 %v971_v61  ;;  %v973_v12 = vadd.f32 1.0, %v1250_v5 }
 0x12b   :  { %v1254_v13 = vpop.eup %1253  ;;  %1275 = vtanh.f32 %v939_v9  ;;  %1019 = vst [vmem:[#allocation4 + $0x10] sm:$0xff] %v939_v9  ;;  %v940_v25 = vadd.f32 %v932_v33, %v876_v6  ;;  %v933_v27 = vmul.f32 %v1252_v51, %v749_v55 }
 0x12c   :  { %v1256_v26 = vpop.eup %1255  ;;  %1277 = vrcp.f32 %v972_v4  ;;  %v974_v16 = vadd.f32 1.0, %v1254_v13 }
 0x12d   :  { %1279 = vtanh.f32 %v940_v25  ;;  %1020 = vst [vmem:[#allocation4 + $0x18] sm:$0xff] %v940_v25  ;;  %v941_v10 = vadd.f32 %v933_v27, %v877_v42  ;;  %v934_v40 = vmul.f32 %v1256_v26, %v750_v11 }
 0x12e   :  { %v1258_v30 = vpop.eup %1257  ;;  %1281 = vrcp.f32 %v973_v12 }
 0x12f   :  { %v1260_v19 = vpop.eup %1259  ;;  %v975_v17 = vadd.f32 1.0, %v1258_v30  ;;  %1283 = vtanh.f32 %v941_v10  ;;  %1021 = vst [vmem:[#allocation4 + $0x20] sm:$0xff] %v941_v10  ;;  %v942_v43 = vadd.f32 %v934_v40, %v878_v22 }
 0x130   :  { %v1262_v39 = vpop.eup %1261  ;;  %v935_v23 = vmul.f32 %v1260_v19, %v751_v18  ;;  %1285 = vrcp.f32 %v974_v16 }
 0x131   :  { %v1264_v46 = vpop.eup %1263  ;;  %v976_v15 = vadd.f32 1.0, %v1262_v39  ;;  %1287 = vtanh.f32 %v942_v43  ;;  %1022 = vst [vmem:[#allocation4 + $0x28] sm:$0xff] %v942_v43 }
 0x132   :  { %v943_v59 = vadd.f32 %v935_v23, %v879_v34  ;;  %v936_v2 = vmul.f32 %v1264_v46, %v752_v56  ;;  %1289 = vrcp.f32 %v975_v17  ;;  %v1266_v62 = vpop.eup %1265 }
 0x134   :  { %1291 = vtanh.f32 %v943_v59  ;;  %1023 = vst [vmem:[#allocation4 + $0x30] sm:$0xff] %v943_v59  ;;  %v944_v21 = vadd.f32 %v936_v2, %v880_v63  ;;  %v1268_v37 = vpop.eup %1267 }
 0x135   :  { %1293 = vrcp.f32 %v976_v15  ;;  %v1270_v7 = vpop.eup %1269  ;;  %v1001_v8 = vmul.f32 %v1268_v37, %v1266_v62 }
 0x136   :  { %1295 = vtanh.f32 %v944_v21  ;;  %1024 = vst [vmem:[#allocation4 + $0x38] sm:$0xff] %v944_v21  ;;  %v1272_v50 = vpop.eup %1271 }
 0x137   :  { %1308 = shalt.err (!%p1305_p4)
}
 0x138   :  { %s1344_s17 = smov 256   ;;  %s1345_s18 = smov 16   ;;  %v1274_v52 = vpop.eup %1273  ;;  %1009 = vst [vmem:[#allocation2] sm:$0xff] %v1001_v8  ;;  %v1002_v53 = vmul.f32 %v1272_v50, %v1270_v7 }
 0x139   :  { %1048 = dma.vmem_to_hbm [thread:$0]  %s1043_s16, 1024, %s1889_s8, [#allocation5], %s1344_s17, %s1344_s17, %s1345_s18   ;;  %v1276_v54 = vpop.eup %1275 }
 0x13a   :  { %v1278_v44 = vpop.eup %1277  ;;  %1010 = vst [vmem:[#allocation2 + $0x8] sm:$0xff] %v1002_v53  ;;  %v1003_v32 = vmul.f32 %v1276_v54, %v1274_v52  ;;  %s1346_s8 = smov [#allocation2]  }
 0x13b   :  { %v1280_v41 = vpop.eup %1279  ;;  %s1030_s19 = sshll.u32 %s1346_s8, 4  ;;  %s1031_s19 = int_to_ptr.vmem [resolvable:$true] %s1030_s19 }
 0x13c   :  { %v1282_v57 = vpop.eup %1281  ;;  %1011 = vst [vmem:[#allocation2 + $0x10] sm:$0xff] %v1003_v32  ;;  %v1004_v58 = vmul.f32 %v1280_v41, %v1278_v44  ;;  %s1317_s20 = scalar_lea.vmem %s1031_s19, 1024  ;;  %p1322_p6 = scmp.lt.s32.totalorder %s1031_s19, %s1031_s19 }
 0x13d   :  { %v1284_v60 = vpop.eup %1283  ;;  %p1318_p5 = scmp.ne.s32.totalorder %s1031_s19, %s1317_s20  ;;  %p1323_p7 = scmp.lt.s32.totalorder %s1317_s20, %s1317_s20 }
 0x13e   :  { %v1286_v14 = vpop.eup %1285  ;;  %1012 = vst [vmem:[#allocation2 + $0x18] sm:$0xff] %v1004_v58  ;;  %v1005_v20 = vmul.f32 %v1284_v60, %v1282_v57 }
 0x13f   :  { %v1288_v61 = vpop.eup %1287  ;;  %p1324_p8 = por %p1323_p7, %p1322_p6 }
 0x140   :  { %v1290_v45 = vpop.eup %1289  ;;  %1013 = vst [vmem:[#allocation2 + $0x20] sm:$0xff] %v1005_v20  ;;  %v1006_v47 = vmul.f32 %v1288_v61, %v1286_v14 }
 0x141   :  { %v1292_v29 = vpop.eup %1291  ;;  %p1325_p9 = pnand %p1324_p8, %p1318_p5 }
 0x142   :  { %v1294_v0 = vpop.eup %1293  ;;  %1014 = vst [vmem:[#allocation2 + $0x28] sm:$0xff] %v1006_v47  ;;  %v1007_v1 = vmul.f32 %v1292_v29, %v1290_v45 }
 0x143   :  { %v1296_v3 = vpop.eup %1295 }
 0x144   :  { %1015 = vst [vmem:[#allocation2 + $0x30] sm:$0xff] %v1007_v1  ;;  %v1008_v28 = vmul.f32 %v1296_v3, %v1294_v0 }
 0x146   :  { %1016 = vst [vmem:[#allocation2 + $0x38] sm:$0xff] %v1008_v28 }
 0x147   :  { %1328 = shalt.err (!%p1325_p9)
}
 0x148   :  { %1036 = dma.vmem_to_hbm [thread:$0]  %s1031_s19, 1024, %s1888_s7, [#allocation3], %s1344_s17, %s1344_s17, %s1345_s18  }
 0x149   :  { %1337 = dma.done.wait [#allocation3], 1024  }
 0x14a   :  { %1338 = vsyncadd [#allocation3], 4294966272 }
 0x14b   :  { %1339 = dma.done.wait [#allocation5], 1024  }
 0x14c   :  { %1340 = vsyncadd [#allocation5], 4294966272 }
 0x14d   :  { %1055 = vsyncpa [#allocation3], 1 }
 0x14e   :  { %1056 = vsyncpa [#allocation5], 1 }

</bundles_post_ra>
